<compile_context>
chip_gen: v7x
topology: tpu7x:2x2x1
jax: 0.10.0
libtpu: 0.0.40
codegen_flags: <defaults>
</compile_context>

<pallas_src>
import jax
import jax.numpy as jnp
from jax.experimental import pallas as pl
from jax.experimental.pallas import tpu as pltpu

N_NODES = 34        # KarateClub: 34 nodes
NUM_FEATURES = 34   # identity (one-hot) node features
NUM_CLASSES = 4     # KarateClub: 4 communities
HID1, HID2, HID3 = 4, 4, 2

NROW_PAD = 40       # node axis padded to next multiple of 8 (sublane granularity)
LANE_PAD = 128      # feature/class axis padded to one lane width
KSLICE = 8          # packed-weight contraction width (>= max hidden dim, multiple of 8)

# Lane layout of the single merged output buffer.
EMB_LANES = (0, HID3)              # final embedding: lanes 0..1
CLS_LANES = (8, 8 + NUM_CLASSES)   # classifier logits: lanes 8..11


def _pad2d(x, rows, cols):
    return jnp.pad(x, ((0, rows - x.shape[0]), (0, cols - x.shape[1])))


def gcn_kernel(a_ref, xw1_ref, w_ref, b_ref, out_ref):
    """Full GCN forward on padded tiles, fully VMEM-resident (all f32).

    a_ref   : (40, 40)   normalized dense adjacency A_hat (zero-padded)
    xw1_ref : (40, 128)  X @ W1, zero-padded (features in lanes 0..3)
    w_ref   : (24, 128)  packed weights: rows 0..7 = W2 (4x4 at lanes 0..3),
                         rows 8..15 = W3 (4x2 at lanes 0..1),
                         rows 16..23 = Wc (2x4 at lanes 8..11)
    b_ref   : (8, 128)   packed biases: row0=b1, row1=b2, row2=b3 (lanes 0..),
                         row3=bc at lanes 8..11
    out_ref : (40, 128)  merged output: embedding lanes 0..1, logits lanes 8..11
    """
    f32 = jnp.float32
    a = a_ref[...]                       # (40, 40)
    b1 = b_ref[0:1, :]
    b2 = b_ref[1:2, :]
    b3 = b_ref[2:3, :]
    bc = b_ref[3:4, :]                   # classes already at lanes 8..11

    # conv1 + tanh  (X @ W1 folded into xw1_ref by the jitted wrapper)
    h = jnp.tanh(jnp.dot(a, xw1_ref[...], preferred_element_type=f32) + b1)

    # conv2 + tanh: contract only the 8 meaningful lanes of h against the packed W2.
    h = jnp.dot(h[:, :KSLICE], w_ref[0:KSLICE, :], preferred_element_type=f32)
    h = jnp.tanh(jnp.dot(a, h, preferred_element_type=f32) + b2)

    # conv3 + tanh
    h = jnp.dot(h[:, :KSLICE], w_ref[KSLICE:2 * KSLICE, :], preferred_element_type=f32)
    h = jnp.tanh(jnp.dot(a, h, preferred_element_type=f32) + b3)

    # classifier: Wc columns are packed at lanes 8..11, so logits land there directly;
    # the final embedding h lives in lanes 0..1 -> merge by addition (disjoint lanes).
    logits = jnp.dot(h[:, :KSLICE], w_ref[2 * KSLICE:3 * KSLICE, :],
                     preferred_element_type=f32) + bc
    merged = h + logits

    # Zero the padded node rows (34..39) so no tanh(bias) garbage escapes the kernel.
    row_ids = jax.lax.broadcasted_iota(jnp.int32, (NROW_PAD, LANE_PAD), 0)
    out_ref[...] = jnp.where(row_ids < N_NODES, merged, 0.0)


def pack_gcn_constants(a_hat, params):
    """One-time setup: pad A_hat and pack the tiny weights/biases into aligned tiles."""
    w1, b1, w2, b2, w3, b3, wc, bc = params
    del w1, b1  # W1/b1 are consumed by the jitted wrapper / kernel bias row 0 below

    a_p = _pad2d(a_hat.astype(jnp.float32), NROW_PAD, NROW_PAD)

    w_pack = jnp.zeros((3 * KSLICE, LANE_PAD), jnp.float32)
    w_pack = w_pack.at[0:HID1, 0:HID2].set(w2)                                    # W2
    w_pack = w_pack.at[KSLICE:KSLICE + HID2, 0:HID3].set(w3)                      # W3
    w_pack = w_pack.at[2 * KSLICE:2 * KSLICE + HID3,
                       CLS_LANES[0]:CLS_LANES[1]].set(wc)                         # Wc

    b1 = params[1]
    b_pack = jnp.zeros((8, LANE_PAD), jnp.float32)
    b_pack = b_pack.at[0, :HID1].set(b1)
    b_pack = b_pack.at[1, :HID2].set(b2)
    b_pack = b_pack.at[2, :HID3].set(b3)
    b_pack = b_pack.at[3, CLS_LANES[0]:CLS_LANES[1]].set(bc)

    return a_p, w_pack, b_pack


@jax.jit
def gcn_forward_core(a_p, w_pack, b_pack, x, w1):
    """Jitted per-call path: tiny xw1 matmul + one gridless Pallas call."""
    xw1 = x.astype(jnp.float32) @ w1                      # (34, 4), negligible
    xw1_p = _pad2d(xw1, NROW_PAD, LANE_PAD)

    vmem = pl.BlockSpec(memory_space=pltpu.MemorySpace.VMEM)
    out_p = pl.pallas_call(
        gcn_kernel,
        in_specs=[vmem, vmem, vmem, vmem],                # a, xw1, w_pack, b_pack
        out_specs=vmem,
        out_shape=jax.ShapeDtypeStruct((NROW_PAD, LANE_PAD), jnp.float32),
    )(a_p, xw1_p, w_pack, b_pack)

    out = out_p[:N_NODES, CLS_LANES[0]:CLS_LANES[1]]
    h = out_p[:N_NODES, EMB_LANES[0]:EMB_LANES[1]]
    return out, h


def gcn_forward(a_hat, x, params):
    """Convenience wrapper (packs constants on every call; prefer packing once)."""
    a_p, w_pack, b_pack = pack_gcn_constants(a_hat, params)
    return gcn_forward_core(a_p, w_pack, b_pack, x, params[0])


def gcn_reference(a_hat, x, params):
    """Pure-JAX reference for correctness checking."""
    w1, b1, w2, b2, w3, b3, wc, bc = params
    h = jnp.tanh(a_hat @ (x @ w1) + b1)
    h = jnp.tanh(a_hat @ (h @ w2) + b2)
    h = jnp.tanh(a_hat @ (h @ w3) + b3)
    out = h @ wc + bc
    return out, h


def build_graph():
    """Deterministic synthetic 34-node graph (ring + chords), symmetric."""
    src, dst = [], []
    for i in range(N_NODES):
        for j in (i + 1, i + 5):
            a, b = i, j % N_NODES
            src += [a, b]
            dst += [b, a]
    edge_index = jnp.array([src, dst], dtype=jnp.int32)

    # Dense adjacency, add self-loops, symmetric GCN normalization.
    adj = jnp.zeros((N_NODES, N_NODES), dtype=jnp.float32)
    adj = adj.at[edge_index[1], edge_index[0]].set(1.0)
    adj = adj + jnp.eye(N_NODES, dtype=jnp.float32)
    deg = adj.sum(axis=1)
    d_inv_sqrt = jnp.where(deg > 0, 1.0 / jnp.sqrt(deg), 0.0)
    a_hat = d_inv_sqrt[:, None] * adj * d_inv_sqrt[None, :]
    return a_hat, edge_index


def init_params(key):
    """Deterministic glorot-uniform init (shapes match the PyTorch module)."""
    def glorot(key, shape):
        fan_in, fan_out = shape
        lim = jnp.sqrt(6.0 / (fan_in + fan_out))
        return jax.random.uniform(key, shape, jnp.float32, -lim, lim)

    k1, k2, k3, k4, kb1, kb2, kb3, kbc = jax.random.split(key, 8)
    w1 = glorot(k1, (NUM_FEATURES, HID1))
    w2 = glorot(k2, (HID1, HID2))
    w3 = glorot(k3, (HID2, HID3))
    # torch Linear(2, 4): weight is [out, in]; store transposed [in, out].
    wc = glorot(k4, (HID3, NUM_CLASSES))
    # Small non-zero biases so the bias path is exercised by the check.
    b1 = jax.random.uniform(kb1, (HID1,), jnp.float32, -0.1, 0.1)
    b2 = jax.random.uniform(kb2, (HID2,), jnp.float32, -0.1, 0.1)
    b3 = jax.random.uniform(kb3, (HID3,), jnp.float32, -0.1, 0.1)
    bc = jax.random.uniform(kbc, (NUM_CLASSES,), jnp.float32, -0.1, 0.1)
    return (w1, b1, w2, b2, w3, b3, wc, bc)


if __name__ == "__main__":
    key = jax.random.PRNGKey(0)
    a_hat, edge_index = build_graph()
    x = jnp.eye(N_NODES, NUM_FEATURES, dtype=jnp.float32)  # KarateClub identity feats
    params = init_params(key)

    # Pack parameter-derived tiles once at setup (hoisted out of the per-call path).
    a_p, w_pack, b_pack = pack_gcn_constants(a_hat, params)

    out, h = gcn_forward_core(a_p, w_pack, b_pack, x, params[0])
    out, h = jax.block_until_ready(out), jax.block_until_ready(h)

    out_ref, h_ref = gcn_reference(a_hat, x, params)
    assert out.shape == (N_NODES, NUM_CLASSES) and h.shape == (N_NODES, HID3)
    assert jnp.allclose(out, out_ref, atol=1e-3, rtol=1e-3)
    assert jnp.allclose(h, h_ref, atol=1e-3, rtol=1e-3)

    print("KERNEL_OK")
</pallas_src>

<mosaic_0001>
module attributes {stable_mosaic.version = 11 : i64} {
  func.func @gcn_kernel(%arg0: memref<40x40xf32, #tpu.memory_space<vmem>>, %arg1: memref<40x128xf32, #tpu.memory_space<vmem>>, %arg2: memref<24x128xf32, #tpu.memory_space<vmem>>, %arg3: memref<8x128xf32, #tpu.memory_space<vmem>>, %arg4: memref<40x128xf32, #tpu.memory_space<vmem>>) attributes {dimension_semantics = [], scalar_prefetch = 0 : i64, scratch_operands = 0 : i64, tpu.core_type = #tpu.core_type<tc>} {
    %c0 = arith.constant 0 : index
    %c0_0 = arith.constant 0 : index
    %0 = vector.load %arg0[%c0, %c0_0] : memref<40x40xf32, #tpu.memory_space<vmem>>, vector<40x40xf32>
    %c0_1 = arith.constant 0 : index
    %c0_2 = arith.constant 0 : index
    %1 = vector.load %arg3[%c0_1, %c0_2] : memref<8x128xf32, #tpu.memory_space<vmem>>, vector<1x128xf32>
    %c1 = arith.constant 1 : index
    %c0_3 = arith.constant 0 : index
    %2 = vector.load %arg3[%c1, %c0_3] : memref<8x128xf32, #tpu.memory_space<vmem>>, vector<1x128xf32>
    %c2 = arith.constant 2 : index
    %c0_4 = arith.constant 0 : index
    %3 = vector.load %arg3[%c2, %c0_4] : memref<8x128xf32, #tpu.memory_space<vmem>>, vector<1x128xf32>
    %c3 = arith.constant 3 : index
    %c0_5 = arith.constant 0 : index
    %4 = vector.load %arg3[%c3, %c0_5] : memref<8x128xf32, #tpu.memory_space<vmem>>, vector<1x128xf32>
    %c0_6 = arith.constant 0 : index
    %c0_7 = arith.constant 0 : index
    %5 = vector.load %arg1[%c0_6, %c0_7] : memref<40x128xf32, #tpu.memory_space<vmem>>, vector<40x128xf32>
    %cst = arith.constant dense<0.000000e+00> : vector<40x128xf32>
    %6 = tpu.matmul %0, %5, %cst {dimension_numbers = #tpu.dot_dimension_numbers<[1], [0], [0], [1], [0, 0, 1, 1], [], []>} : vector<40x40xf32>, vector<40x128xf32>, vector<40x128xf32> -> vector<40x128xf32>
    %7 = vector.broadcast %1 : vector<1x128xf32> to vector<40x128xf32>
    %8 = arith.addf %6, %7 : vector<40x128xf32>
    %9 = math.tanh %8 : vector<40x128xf32>
    %10 = vector.extract_strided_slice %9 {offsets = [0, 0], sizes = [40, 8], strides = [1, 1]} : vector<40x128xf32> to vector<40x8xf32>
    %c0_8 = arith.constant 0 : index
    %c0_9 = arith.constant 0 : index
    %11 = vector.load %arg2[%c0_8, %c0_9] : memref<24x128xf32, #tpu.memory_space<vmem>>, vector<8x128xf32>
    %cst_10 = arith.constant dense<0.000000e+00> : vector<40x128xf32>
    %12 = tpu.matmul %10, %11, %cst_10 {dimension_numbers = #tpu.dot_dimension_numbers<[1], [0], [0], [1], [0, 0, 1, 1], [], []>} : vector<40x8xf32>, vector<8x128xf32>, vector<40x128xf32> -> vector<40x128xf32>
    %cst_11 = arith.constant dense<0.000000e+00> : vector<40x128xf32>
    %13 = tpu.matmul %0, %12, %cst_11 {dimension_numbers = #tpu.dot_dimension_numbers<[1], [0], [0], [1], [0, 0, 1, 1], [], []>} : vector<40x40xf32>, vector<40x128xf32>, vector<40x128xf32> -> vector<40x128xf32>
    %14 = vector.broadcast %2 : vector<1x128xf32> to vector<40x128xf32>
    %15 = arith.addf %13, %14 : vector<40x128xf32>
    %16 = math.tanh %15 : vector<40x128xf32>
    %17 = vector.extract_strided_slice %16 {offsets = [0, 0], sizes = [40, 8], strides = [1, 1]} : vector<40x128xf32> to vector<40x8xf32>
    %c8 = arith.constant 8 : index
    %c0_12 = arith.constant 0 : index
    %18 = vector.load %arg2[%c8, %c0_12] : memref<24x128xf32, #tpu.memory_space<vmem>>, vector<8x128xf32>
    %cst_13 = arith.constant dense<0.000000e+00> : vector<40x128xf32>
    %19 = tpu.matmul %17, %18, %cst_13 {dimension_numbers = #tpu.dot_dimension_numbers<[1], [0], [0], [1], [0, 0, 1, 1], [], []>} : vector<40x8xf32>, vector<8x128xf32>, vector<40x128xf32> -> vector<40x128xf32>
    %cst_14 = arith.constant dense<0.000000e+00> : vector<40x128xf32>
    %20 = tpu.matmul %0, %19, %cst_14 {dimension_numbers = #tpu.dot_dimension_numbers<[1], [0], [0], [1], [0, 0, 1, 1], [], []>} : vector<40x40xf32>, vector<40x128xf32>, vector<40x128xf32> -> vector<40x128xf32>
    %21 = vector.broadcast %3 : vector<1x128xf32> to vector<40x128xf32>
    %22 = arith.addf %20, %21 : vector<40x128xf32>
    %23 = math.tanh %22 : vector<40x128xf32>
    %24 = vector.extract_strided_slice %23 {offsets = [0, 0], sizes = [40, 8], strides = [1, 1]} : vector<40x128xf32> to vector<40x8xf32>
    %c16 = arith.constant 16 : index
    %c0_15 = arith.constant 0 : index
    %25 = vector.load %arg2[%c16, %c0_15] : memref<24x128xf32, #tpu.memory_space<vmem>>, vector<8x128xf32>
    %cst_16 = arith.constant dense<0.000000e+00> : vector<40x128xf32>
    %26 = tpu.matmul %24, %25, %cst_16 {dimension_numbers = #tpu.dot_dimension_numbers<[1], [0], [0], [1], [0, 0, 1, 1], [], []>} : vector<40x8xf32>, vector<8x128xf32>, vector<40x128xf32> -> vector<40x128xf32>
    %27 = vector.broadcast %4 : vector<1x128xf32> to vector<40x128xf32>
    %28 = arith.addf %26, %27 : vector<40x128xf32>
    %29 = arith.addf %23, %28 : vector<40x128xf32>
    %30 = tpu.iota {dimensions = array<i32: 0>} : vector<40x128xi32>
    %c34_i32 = arith.constant 34 : i32
    %31 = vector.broadcast %c34_i32 : i32 to vector<40x128xi32>
    %32 = arith.cmpi slt, %30, %31 : vector<40x128xi32>
    %cst_17 = arith.constant 0.000000e+00 : f32
    %33 = vector.broadcast %cst_17 : f32 to vector<40x128xf32>
    %34 = arith.select %32, %29, %33 : vector<40x128xi1>, vector<40x128xf32>
    %c0_18 = arith.constant 0 : index
    %c0_19 = arith.constant 0 : index
    %35 = vector.load %arg4[%c0_18, %c0_19] : memref<40x128xf32, #tpu.memory_space<vmem>>, vector<40x128xf32>
    tpu.vector_store %arg4[%c0_18, %c0_19], %34 {strides = array<i32>} : memref<40x128xf32, #tpu.memory_space<vmem>>, vector<40x128xf32>,
    return
  }
}

</mosaic_0001>

<bundles_post_ra>
// kernel: gcn_forward_core.1
= control target key start
LH: loop header
LB: loop body
LE: loop exit
PB: predicated region body
PF: predicated region fallthrough
CT: control target
= control target key end

     0   :  { %v958_v0 = vmov 0.0|0.0   ;;  %vm959_vm0 = vmmov 0   ;;  %v960_v4 = vmov 0.0   ;;  %vm35_vm1 = vcmask 326656   ;;  %s1180_s1 = inlined_call_operand.vmem [shape: f32[40,128], index: 1, kind: input, shape index: {}]   ;;  %s1181_s0 = inlined_call_operand.vmem [shape: f32[40,40], index: 0, kind: input, shape index: {}]   ;;  %s1182_s2 = inlined_call_operand.vmem [shape: f32[24,128], index: 2, kind: input, shape index: {}]   ;;  %s1183_s3 = inlined_call_operand.vmem [shape: f32[8,128], index: 3, kind: input, shape index: {}]   ;;  %s1184_s4 = inlined_call_operand.vmem [shape: f32[40,128], index: 4, kind: output, shape index: {}]  }
   0x1   :  { %905 = vmatprep.subr.bf16.mxu0 %v958_v0  ;;  %v26_v1 = vld [vmem:[%s1180_s1] sm:$0xff]  ;;  %v27_v2 = vld [vmem:[%s1180_s1 + $0x8] sm:$0xff]  ;;  %v28_v3 = vld [vmem:[%s1180_s1 + $0x10] sm:$0xff]  ;;  %789 = vmatprep.mubr.msk.f32.mxu0 %vm959_vm0, %v960_v4  ;;  %vm147_vm2 = vcmask 64512  }
   0x2   :  { %v906_v5 = vpack.c.bf16 %v27_v2, %v26_v1  ;;  %v29_v6 = vld [vmem:[%s1180_s1 + $0x18] sm:$0xff]  ;;  %804 = vmatprep.subr.mxu1 %v960_v4  ;;  %806 = vmatprep.mubr.msk.f32.mxu1 %vm959_vm0, %v960_v4  ;;  %v30_v8 = vld [vmem:[%s1180_s1 + $0x20] sm:$0xff]  ;;  %v1022_v10 = vld [vmem:[%s1181_s0 + $0x8] sm:$0xff] }
   0x3   :  { %v909_v7 = vpack.c.bf16 %v29_v6, %v28_v3  ;;  %v1012_v9 = vld [vmem:[%s1181_s0] sm:$0xff]  ;;  %v1031_v11 = vld [vmem:[%s1181_s0 + $0x10] sm:$0xff]  ;;  %v1040_v12 = vld [vmem:[%s1181_s0 + $0x18] sm:$0xff] }
   0x4   :  { %907 = vmatpush3.bf16.msra.mxu0 %v906_v5  ;;  %v1049_v13 = vld [vmem:[%s1181_s0 + $0x20] sm:$0xff]  ;;  %v352_v48 = vld [vmem:[%s1182_s2 + $0x8] sm:$0xff] }
   0x5   :  { %908 = vmatprep.subr.bf16.mxu0 %v958_v0  ;;  %v146_v14 = vld [vmem:[%s1182_s2] sm:$0xff] }
   0x6   :  { %805 = vmatpush3.msra.mxu1 %v146_v14  ;;  %v697_v15 = vld [vmem:[%s1183_s3] ss:$0 sm:$0xff]  ;;  %v708_v49 = vld [vmem:[%s1183_s3 + $0x1] ss:$0 sm:$0xff] }
   0x7   :  { %911 = vmatprep.subr.bf16.mxu1 %v958_v0 }
   0x8   :  { %910 = vmatpush3.bf16.msra.mxu0 %v909_v7 }
   0x9   :  { %787 = vmatprep.subr.mxu0 %v960_v4 }
   0xc   :  { %788 = vmatpush3.msra.mxu0 %v30_v8 }
   0xd   :  { %790 = vmatmul.mubr.msk.f32.vlgmr.msra.gmra.mrb[0].mxu0 %vm35_vm1, %v1012_v9  ;;  %846 = vmatprep.subr.mxu0 %v960_v4 }
   0xe   :  { %792 = vmatprep.mubr.msk.f32.mxu0 %vm959_vm0, %v960_v4  ;;  %847 = vmatpush3.msra.mxu0 %v352_v48  ;;  %v672_v48 = vlaneseq }
   0xf   :  { %888 = vmatprep.subr.mxu0 %v960_v4 }
  0x11   :  { %793 = vmatmul.mubr.msk.f32.gmra.mrb[2].mxu0 %vm35_vm1, %v1022_v10 }
  0x12   :  { %795 = vmatprep.mubr.msk.f32.mxu0 %vm959_vm0, %v960_v4 }
  0x15   :  { %796 = vmatmul.mubr.msk.f32.gmra.mrb[4].mxu0 %vm35_vm1, %v1031_v11 }
  0x16   :  { %798 = vmatprep.mubr.msk.f32.mxu0 %vm959_vm0, %v960_v4 }
  0x19   :  { %799 = vmatmul.mubr.msk.f32.gmra.mrb[6].mxu0 %vm35_vm1, %v1040_v12 }
  0x1a   :  { %801 = vmatprep.mubr.msk.f32.mxu0 %vm959_vm0, %v960_v4 }
  0x1d   :  { %802 = vmatmul.mubr.msk.f32.gmra.mrb[8].mxu0 %vm35_vm1, %v1049_v13 }
  0x1e   :  { %848 = vmatprep.mubr.msk.f32.mxu0 %vm959_vm0, %v960_v4 }
  0xe0   :  { %v117_v16 = vpop.f32.mrb[0].mxu0 }
  0xe1   :  { %v118_v17 = vadd.f32 %v697_v15, %v117_v16  ;;  %v791_v18 = vpop.f32.mrb[1].mxu0 }
  0xe3   :  { %928 = vtanh.f32 %v118_v17 }
  0xe4   :  { %v122_v19 = vpop.f32.mrb[2].mxu0 }
  0xe5   :  { %v123_v20 = vadd.f32 %v697_v15, %v122_v19  ;;  %v794_v21 = vpop.f32.mrb[3].mxu0 }
  0xe7   :  { %930 = vtanh.f32 %v123_v20 }
  0xe8   :  { %v127_v22 = vpop.f32.mrb[4].mxu0 }
  0xe9   :  { %v128_v23 = vadd.f32 %v697_v15, %v127_v22  ;;  %v797_v24 = vpop.f32.mrb[5].mxu0 }
  0xeb   :  { %932 = vtanh.f32 %v128_v23 }
  0xec   :  { %v132_v25 = vpop.f32.mrb[6].mxu0 }
  0xed   :  { %v929_v26 = vpop.eup %928  ;;  %v133_v27 = vadd.f32 %v697_v15, %v132_v25  ;;  %v800_v28 = vpop.f32.mrb[7].mxu0 }
  0xee   :  { %807 = vmatmul.mubr.msk.f32.vlgmr.msra.gmra.mrb[0].mxu1 %vm147_vm2, %v929_v26 }
  0xef   :  { %934 = vtanh.f32 %v133_v27  ;;  %809 = vmatprep.mubr.msk.f32.mxu1 %vm959_vm0, %v960_v4 }
  0xf0   :  { %v137_v29 = vpop.f32.mrb[8].mxu0 }
  0xf1   :  { %v931_v30 = vpop.eup %930  ;;  %v138_v31 = vadd.f32 %v697_v15, %v137_v29  ;;  %v803_v32 = vpop.f32.mrb[9].mxu0 }
  0xf2   :  { %810 = vmatmul.mubr.msk.f32.gmra.mrb[2].mxu1 %vm147_vm2, %v931_v30 }
  0xf3   :  { %936 = vtanh.f32 %v138_v31  ;;  %812 = vmatprep.mubr.msk.f32.mxu1 %vm959_vm0, %v960_v4 }
  0xf5   :  { %v933_v33 = vpop.eup %932 }
  0xf6   :  { %813 = vmatmul.mubr.msk.f32.gmra.mrb[4].mxu1 %vm147_vm2, %v933_v33 }
  0xf7   :  { %815 = vmatprep.mubr.msk.f32.mxu1 %vm959_vm0, %v960_v4 }
  0xf9   :  { %v935_v34 = vpop.eup %934 }
  0xfa   :  { %816 = vmatmul.mubr.msk.f32.gmra.mrb[6].mxu1 %vm147_vm2, %v935_v34 }
  0xfb   :  { %818 = vmatprep.mubr.msk.f32.mxu1 %vm959_vm0, %v960_v4 }
  0xfd   :  { %v937_v35 = vpop.eup %936 }
  0xfe   :  { %819 = vmatmul.mubr.msk.f32.gmra.mrb[8].mxu1 %vm147_vm2, %v937_v35 }
  0xff   :  { %831 = vmatprep.mubr.msk.f32.mxu1 %vm959_vm0, %v960_v4 }
 0x1c1   :  { %v229_v36 = vpop.f32.mrb[0].mxu1 }
 0x1c2   :  { %v808_v37 = vpop.f32.mrb[1].mxu1 }
 0x1c5   :  { %v234_v38 = vpop.f32.mrb[2].mxu1 }
 0x1c6   :  { %v912_v39 = vpack.c.bf16 %v234_v38, %v229_v36  ;;  %v811_v40 = vpop.f32.mrb[3].mxu1 }
 0x1c8   :  { %913 = vmatpush3.bf16.msra.mxu1 %v912_v39 }
 0x1c9   :  { %v239_v41 = vpop.f32.mrb[4].mxu1  ;;  %914 = vmatprep.subr.bf16.mxu1 %v958_v0 }
 0x1ca   :  { %v814_v42 = vpop.f32.mrb[5].mxu1 }
 0x1cd   :  { %v244_v43 = vpop.f32.mrb[6].mxu1 }
 0x1ce   :  { %v915_v44 = vpack.c.bf16 %v244_v43, %v239_v41  ;;  %v817_v45 = vpop.f32.mrb[7].mxu1  ;;  %v725_v41 = vld [vmem:[%s1183_s3 + $0x3] ss:$0 sm:$0xff] }
 0x1d0   :  { %916 = vmatpush3.bf16.msra.mxu1 %v915_v44 }
 0x1d1   :  { %v249_v46 = vpop.f32.mrb[8].mxu1  ;;  %829 = vmatprep.subr.mxu1 %v960_v4 }
 0x1d2   :  { %v820_v47 = vpop.f32.mrb[9].mxu1 }
 0x1d4   :  { %830 = vmatpush3.msra.mxu1 %v249_v46 }
 0x1d5   :  { %832 = vmatmul.mubr.msk.f32.vlgmr.msra.gmra.mrb[10].mxu1 %vm35_vm1, %v1012_v9  ;;  %917 = vmatprep.subr.bf16.mxu1 %v958_v0 }
 0x1d6   :  { %834 = vmatprep.mubr.msk.f32.mxu1 %vm959_vm0, %v960_v4 }
 0x1d9   :  { %835 = vmatmul.mubr.msk.f32.gmra.mrb[12].mxu1 %vm35_vm1, %v1022_v10 }
 0x1da   :  { %837 = vmatprep.mubr.msk.f32.mxu1 %vm959_vm0, %v960_v4 }
 0x1dd   :  { %838 = vmatmul.mubr.msk.f32.gmra.mrb[14].mxu1 %vm35_vm1, %v1031_v11 }
 0x1de   :  { %840 = vmatprep.mubr.msk.f32.mxu1 %vm959_vm0, %v960_v4 }
 0x1e1   :  { %841 = vmatmul.mubr.msk.f32.gmra.mrb[16].mxu1 %vm35_vm1, %v1040_v12 }
 0x1e2   :  { %843 = vmatprep.mubr.msk.f32.mxu1 %vm959_vm0, %v960_v4 }
 0x1e5   :  { %844 = vmatmul.mubr.msk.f32.gmra.mrb[18].mxu1 %vm35_vm1, %v1049_v13 }
 0x1e6   :  { %873 = vmatprep.mubr.msk.f32.mxu1 %vm959_vm0, %v960_v4 }
 0x2a8   :  { %v323_v50 = vpop.f32.mrb[10].mxu1 }
 0x2a9   :  { %v324_v51 = vadd.f32 %v708_v49, %v323_v50  ;;  %v833_v52 = vpop.f32.mrb[11].mxu1 }
 0x2ab   :  { %938 = vtanh.f32 %v324_v51 }
 0x2ac   :  { %v328_v53 = vpop.f32.mrb[12].mxu1 }
 0x2ad   :  { %v329_v54 = vadd.f32 %v708_v49, %v328_v53  ;;  %v836_v55 = vpop.f32.mrb[13].mxu1  ;;  %v673_v53 = vshrl.u32 %v672_v48, 7 }
 0x2af   :  { %940 = vtanh.f32 %v329_v54 }
 0x2b0   :  { %v333_v56 = vpop.f32.mrb[14].mxu1 }
 0x2b1   :  { %v334_v57 = vadd.f32 %v708_v49, %v333_v56  ;;  %v839_v58 = vpop.f32.mrb[15].mxu1 }
 0x2b2   :  { %v677_v58 = vadd.s32 32, %v673_v53 }
 0x2b3   :  { %942 = vtanh.f32 %v334_v57 }
 0x2b4   :  { %v338_v59 = vpop.f32.mrb[16].mxu1  ;;  %vm682_vm3 = vcmp.lt.s32.totalorder %v677_v58, 34 }
 0x2b5   :  { %v939_v60 = vpop.eup %938  ;;  %v339_v61 = vadd.f32 %v708_v49, %v338_v59  ;;  %v842_v62 = vpop.f32.mrb[17].mxu1 }
 0x2b6   :  { %849 = vmatmul.mubr.msk.f32.vlgmr.msra.gmra.mrb[10].mxu0 %vm147_vm2, %v939_v60 }
 0x2b7   :  { %944 = vtanh.f32 %v339_v61  ;;  %851 = vmatprep.mubr.msk.f32.mxu0 %vm959_vm0, %v960_v4 }
 0x2b8   :  { %v343_v63 = vpop.f32.mrb[18].mxu1 }
 0x2b9   :  { %v941_v1 = vpop.eup %940  ;;  %v344_v2 = vadd.f32 %v708_v49, %v343_v63  ;;  %v845_v3 = vpop.f32.mrb[19].mxu1 }
 0x2ba   :  { %852 = vmatmul.mubr.msk.f32.gmra.mrb[12].mxu0 %vm147_vm2, %v941_v1 }
 0x2bb   :  { %946 = vtanh.f32 %v344_v2  ;;  %854 = vmatprep.mubr.msk.f32.mxu0 %vm959_vm0, %v960_v4 }
 0x2bd   :  { %v943_v5 = vpop.eup %942 }
 0x2be   :  { %855 = vmatmul.mubr.msk.f32.gmra.mrb[14].mxu0 %vm147_vm2, %v943_v5 }
 0x2bf   :  { %857 = vmatprep.mubr.msk.f32.mxu0 %vm959_vm0, %v960_v4 }
 0x2c1   :  { %v945_v6 = vpop.eup %944 }
 0x2c2   :  { %858 = vmatmul.mubr.msk.f32.gmra.mrb[16].mxu0 %vm147_vm2, %v945_v6 }
 0x2c3   :  { %860 = vmatprep.mubr.msk.f32.mxu0 %vm959_vm0, %v960_v4 }
 0x2c5   :  { %v947_v7 = vpop.eup %946 }
 0x2c6   :  { %861 = vmatmul.mubr.msk.f32.gmra.mrb[18].mxu0 %vm147_vm2, %v947_v7 }
 0x2c7   :  { %890 = vmatprep.mubr.msk.f32.mxu0 %vm959_vm0, %v960_v4 }
 0x389   :  { %v434_v8 = vpop.f32.mrb[10].mxu0 }
 0x38a   :  { %v850_v14 = vpop.f32.mrb[11].mxu0 }
 0x38d   :  { %v439_v15 = vpop.f32.mrb[12].mxu0 }
 0x38e   :  { %v918_v16 = vpack.c.bf16 %v439_v15, %v434_v8  ;;  %v853_v17 = vpop.f32.mrb[13].mxu0 }
 0x390   :  { %919 = vmatpush3.bf16.msra.mxu1 %v918_v16 }
 0x391   :  { %v444_v18 = vpop.f32.mrb[14].mxu0  ;;  %920 = vmatprep.subr.bf16.mxu1 %v958_v0  ;;  %v557_v0 = vld [vmem:[%s1182_s2 + $0x10] sm:$0xff] }
 0x392   :  { %v856_v19 = vpop.f32.mrb[15].mxu0  ;;  %889 = vmatpush3.msra.mxu0 %v557_v0 }
 0x395   :  { %v449_v20 = vpop.f32.mrb[16].mxu0 }
 0x396   :  { %v921_v21 = vpack.c.bf16 %v449_v20, %v444_v18  ;;  %v859_v22 = vpop.f32.mrb[17].mxu0 }
 0x398   :  { %922 = vmatpush3.bf16.msra.mxu1 %v921_v21 }
 0x399   :  { %v454_v23 = vpop.f32.mrb[18].mxu0  ;;  %871 = vmatprep.subr.mxu1 %v960_v4 }
 0x39a   :  { %v862_v24 = vpop.f32.mrb[19].mxu0 }
 0x39c   :  { %872 = vmatpush3.msra.mxu1 %v454_v23 }
 0x39d   :  { %874 = vmatmul.mubr.msk.f32.vlgmr.msra.gmra.mrb[20].mxu1 %vm35_vm1, %v1012_v9  ;;  %923 = vmatprep.subr.mxu1 %v960_v4  ;;  %v719_v9 = vld [vmem:[%s1183_s3 + $0x2] ss:$0 sm:$0xff] }
 0x39e   :  { %876 = vmatprep.mubr.msk.f32.mxu1 %vm959_vm0, %v960_v4  ;;  %924 = vmatpush3.msra.mxu1 %v557_v0 }
 0x3a1   :  { %877 = vmatmul.mubr.msk.f32.gmra.mrb[22].mxu1 %vm35_vm1, %v1022_v10 }
 0x3a2   :  { %879 = vmatprep.mubr.msk.f32.mxu1 %vm959_vm0, %v960_v4 }
 0x3a5   :  { %880 = vmatmul.mubr.msk.f32.gmra.mrb[24].mxu1 %vm35_vm1, %v1031_v11 }
 0x3a6   :  { %882 = vmatprep.mubr.msk.f32.mxu1 %vm959_vm0, %v960_v4 }
 0x3a9   :  { %883 = vmatmul.mubr.msk.f32.gmra.mrb[26].mxu1 %vm35_vm1, %v1040_v12 }
 0x3aa   :  { %885 = vmatprep.mubr.msk.f32.mxu1 %vm959_vm0, %v960_v4 }
 0x3ad   :  { %886 = vmatmul.mubr.msk.f32.gmra.mrb[28].mxu1 %vm35_vm1, %v1049_v13 }
 0x3ae   :  { %902 = vmatprep.mubr.msk.f32.mxu1 %vm959_vm0, %v960_v4 }
 0x470   :  { %v528_v10 = vpop.f32.mrb[20].mxu1 }
 0x471   :  { %v529_v11 = vadd.f32 %v719_v9, %v528_v10  ;;  %v875_v12 = vpop.f32.mrb[21].mxu1 }
 0x473   :  { %948 = vtanh.f32 %v529_v11 }
 0x474   :  { %v533_v25 = vpop.f32.mrb[22].mxu1 }
 0x475   :  { %v534_v26 = vadd.f32 %v719_v9, %v533_v25  ;;  %v878_v13 = vpop.f32.mrb[23].mxu1 }
 0x477   :  { %950 = vtanh.f32 %v534_v26 }
 0x478   :  { %v538_v27 = vpop.f32.mrb[24].mxu1 }
 0x479   :  { %v539_v28 = vadd.f32 %v719_v9, %v538_v27  ;;  %v881_v29 = vpop.f32.mrb[25].mxu1 }
 0x47b   :  { %952 = vtanh.f32 %v539_v28 }
 0x47c   :  { %v543_v30 = vpop.f32.mrb[26].mxu1 }
 0x47d   :  { %v949_v31 = vpop.eup %948  ;;  %v544_v32 = vadd.f32 %v719_v9, %v543_v30  ;;  %v884_v33 = vpop.f32.mrb[27].mxu1 }
 0x47e   :  { %891 = vmatmul.mubr.msk.f32.vlgmr.msra.gmra.mrb[20].mxu0 %vm147_vm2, %v949_v31 }
 0x47f   :  { %954 = vtanh.f32 %v544_v32  ;;  %893 = vmatprep.mubr.msk.f32.mxu0 %vm959_vm0, %v960_v4 }
 0x480   :  { %v548_v34 = vpop.f32.mrb[28].mxu1 }
 0x481   :  { %v951_v35 = vpop.eup %950  ;;  %v549_v36 = vadd.f32 %v719_v9, %v548_v34  ;;  %v887_v37 = vpop.f32.mrb[29].mxu1 }
 0x482   :  { %894 = vmatmul.mubr.msk.f32.gmra.mrb[22].mxu0 %vm147_vm2, %v951_v35 }
 0x483   :  { %956 = vtanh.f32 %v549_v36  ;;  %896 = vmatprep.mubr.msk.f32.mxu0 %vm959_vm0, %v960_v4 }
 0x485   :  { %v953_v38 = vpop.eup %952 }
 0x486   :  { %897 = vmatmul.mubr.msk.f32.gmra.mrb[24].mxu0 %vm147_vm2, %v953_v38 }
 0x487   :  { %899 = vmatprep.mubr.msk.f32.mxu0 %vm959_vm0, %v960_v4 }
 0x489   :  { %v955_v39 = vpop.eup %954 }
 0x48a   :  { %900 = vmatmul.mubr.msk.f32.gmra.mrb[26].mxu0 %vm147_vm2, %v955_v39 }
 0x48d   :  { %v957_v40 = vpop.eup %956 }
 0x48e   :  { %903 = vmatmul.mubr.msk.f32.vlgmr.msra.gmra.mrb[30].mxu1 %vm147_vm2, %v957_v40 }
 0x551   :  { %v643_v42 = vpop.f32.mrb[20].mxu0 }
 0x552   :  { %v644_v43 = vadd.f32 %v725_v41, %v643_v42  ;;  %v892_v44 = vpop.f32.mrb[21].mxu0 }
 0x554   :  { %v667_v45 = vadd.f32 %v949_v31, %v644_v43 }
 0x555   :  { %v648_v46 = vpop.f32.mrb[22].mxu0 }
 0x556   :  { %688 = vst [vmem:[%s1184_s4] sm:$0xff] %v667_v45  ;;  %v649_v4 = vadd.f32 %v725_v41, %v648_v46  ;;  %v895_v47 = vpop.f32.mrb[23].mxu0 }
 0x558   :  { %v668_v49 = vadd.f32 %v951_v35, %v649_v4 }
 0x559   :  { %v653_v50 = vpop.f32.mrb[24].mxu0 }
 0x55a   :  { %689 = vst [vmem:[%s1184_s4 + $0x8] sm:$0xff] %v668_v49  ;;  %v654_v51 = vadd.f32 %v725_v41, %v653_v50  ;;  %v898_v52 = vpop.f32.mrb[25].mxu0 }
 0x55c   :  { %v669_v54 = vadd.f32 %v953_v38, %v654_v51 }
 0x55d   :  { %v658_v55 = vpop.f32.mrb[26].mxu0 }
 0x55e   :  { %690 = vst [vmem:[%s1184_s4 + $0x10] sm:$0xff] %v669_v54  ;;  %v659_v56 = vadd.f32 %v725_v41, %v658_v55  ;;  %v901_v57 = vpop.f32.mrb[27].mxu0 }
 0x560   :  { %v670_v59 = vadd.f32 %v955_v39, %v659_v56 }
 0x561   :  { %v663_v60 = vpop.f32.mrb[30].mxu1 }
 0x562   :  { %691 = vst [vmem:[%s1184_s4 + $0x18] sm:$0xff] %v670_v59  ;;  %v664_v61 = vadd.f32 %v725_v41, %v663_v60  ;;  %v904_v62 = vpop.f32.mrb[31].mxu1 }
 0x564   :  { %v671_v63 = vadd.f32 %v957_v40, %v664_v61 }
 0x566   :  { %v687_v1 = vsel %vm682_vm3, %v671_v63, 0.0 }
 0x567   :  { %692 = vst [vmem:[%s1184_s4 + $0x20] sm:$0xff] %v687_v1 }

</bundles_post_ra>
